<compile_context>
chip_gen: v7x
topology: tpu7x:2x2x1
jax: 0.10.0
libtpu: 0.0.40
codegen_flags: <defaults>
</compile_context>

<pallas_src>
import math

import jax
import jax.numpy as jnp
from jax import lax
from jax.experimental import pallas as pl
from jax.experimental.pallas import tpu as pltpu


_SQRT1_2 = 1.0 / math.sqrt(2.0)


def _ffn_kernel(x_ref, w1_ref, b1_ref, w2_ref, b2_ref, o_ref, acc_ref):
    """One (TM, D) token tile x one hidden chunk of size Hc.

    grid = (grid_m, grid_h); the hidden-chunk (reduction) axis is the inner,
    "arbitrary" axis.  acc_ref is a f32 (TM, D) accumulator resident across it.
    """
    h_idx = pl.program_id(1)

    @pl.when(h_idx == 0)
    def _init():
        acc_ref[...] = jnp.zeros_like(acc_ref)

    x = x_ref[...]

    # Linear 1 for this hidden chunk: MXU matmul with f32 accumulation + bias.
    h = jnp.dot(x, w1_ref[...], preferred_element_type=jnp.float32)
    h = h + b1_ref[...].astype(jnp.float32)

    # Exact GELU (erf-based, matches torch nn.GELU() default), in f32.
    h = 0.5 * h * (1.0 + lax.erf(h * jnp.float32(_SQRT1_2)))

    # Partial Linear 2: this chunk's contribution, accumulated in f32.
    acc_ref[...] += jnp.dot(h.astype(w2_ref.dtype), w2_ref[...],
                            preferred_element_type=jnp.float32)

    @pl.when(h_idx == pl.num_programs(1) - 1)
    def _finalize():
        o_ref[...] = (acc_ref[...] + b2_ref[...].astype(jnp.float32)
                      ).astype(o_ref.dtype)


def _round_up(a, b):
    return ((a + b - 1) // b) * b


def _vmem_capacity_bytes():
    try:
        return int(pltpu.get_tpu_info().vmem_capacity_bytes)
    except Exception:
        return 64 * 1024 * 1024   # conservative: v7x per-TensorCore capacity


def feed_forward(x, w1, b1, w2, b2, *, block_m=512, hidden_block=512):
    """MLP-Mixer FeedForward: GELU(x @ w1 + b1) @ w2 + b2   (dropout p=0).

    x: (B, S, D); w1: (D, H); b1: (H,); w2: (H, D); b2: (D,).
    Weights are stored (in, out), i.e. transposed vs. torch Linear.
    """
    B, S, D = x.shape
    H = w1.shape[1]
    N = B * S
    itemsize = jnp.dtype(x.dtype).itemsize

    # No activation pad / slice: the ragged last token tile is handled by
    # Pallas' masked edge block (rows are independent, OOB rows are dropped).
    x2d = x.reshape(N, D)

    # ---- hidden-dim chunking ---------------------------------------------
    if H <= hidden_block:
        hc, h_pad = H, H                      # single chunk, full extent
    else:
        hc = max(128, (hidden_block // 128) * 128)   # lane-aligned chunk
        h_pad = _round_up(H, hc)
    if h_pad != H:
        # One-time zero-pad of the weights only; GELU(0) == 0 so the padded
        # hidden units contribute exactly nothing.
        w1 = jnp.pad(w1, ((0, 0), (0, h_pad - H)))
        b1 = jnp.pad(b1, ((0, h_pad - H),))
        w2 = jnp.pad(w2, ((0, h_pad - H), (0, 0)))
    grid_h = h_pad // hc

    b1_2d = b1.reshape(1, h_pad)
    b2_2d = b2.reshape(1, D)

    # ---- token tile size (MXU / sublane aligned) ---------------------------
    if block_m >= N:
        tm = N                                # single full tile (legal: full extent)
    elif block_m >= 256:
        tm = (block_m // 256) * 256
    elif block_m >= 128:
        tm = 128
    else:
        tm = max(8, (block_m // 8) * 8)

    vmem_cap = _vmem_capacity_bytes()

    def resident_bytes(tm_):
        w_bytes = 2 * (D * hc + hc + hc * D + D) * itemsize   # <= 2x buffered
        x_bytes = 2 * tm_ * D * itemsize                      # 2x buffered tile
        o_bytes = 2 * tm_ * D * itemsize
        acc_bytes = tm_ * D * 4
        inter_bytes = tm_ * hc * 4 + tm_ * D * 4              # f32 temporaries
        return w_bytes + x_bytes + o_bytes + acc_bytes + inter_bytes

    # Shrink the token tile if the resident estimate would not fit comfortably
    # (matters on v7x where VMEM is 64 MiB per TensorCore).
    while tm > 256 and resident_bytes(tm) > int(0.6 * vmem_cap):
        tm = max(256, tm // 2)

    grid_m = pl.cdiv(N, tm)

    vmem_limit = min(int(0.75 * vmem_cap),
                     max(32 * 1024 * 1024, 2 * resident_bytes(tm)))

    w_bytes_total = (D * h_pad + h_pad + h_pad * D + D) * itemsize
    cost = pl.CostEstimate(
        flops=4 * N * D * h_pad,                        # two (N, D, H) matmuls
        transcendentals=N * h_pad,                      # erf per hidden element
        bytes_accessed=2 * N * D * itemsize
        + w_bytes_total * (grid_m if grid_h > 1 else 1),
    )

    x_spec = pl.BlockSpec((tm, D), lambda i, h: (i, 0))      # re-used across h
    o_spec = pl.BlockSpec((tm, D), lambda i, h: (i, 0))      # resident across h

    def weight_specs(single_buffer):
        def spec(shape, index_map, invariant):
            if single_buffer and invariant:
                # Grid-invariant operand: no prefetch overlap needed, so halve
                # its resident VMEM cost.
                return pl.BlockSpec(shape, index_map,
                                    pipeline_mode=pl.Buffered(1))
            return pl.BlockSpec(shape, index_map)

        invariant_w = (grid_h == 1)   # chunks change with h otherwise
        return [
            spec((D, hc), lambda i, h: (0, h), invariant_w),   # w1 chunk
            spec((1, hc), lambda i, h: (0, h), invariant_w),   # b1 chunk
            spec((hc, D), lambda i, h: (h, 0), invariant_w),   # w2 chunk
            spec((1, D), lambda i, h: (0, 0), True),           # b2 (always const)
        ]

    def run(single_buffer):
        return pl.pallas_call(
            _ffn_kernel,
            out_shape=jax.ShapeDtypeStruct((N, D), x.dtype),
            grid_spec=pltpu.PrefetchScalarGridSpec(
                num_scalar_prefetch=0,
                grid=(grid_m, grid_h),
                in_specs=[x_spec] + weight_specs(single_buffer),
                out_specs=o_spec,
                scratch_shapes=[pltpu.VMEM((tm, D), jnp.float32)],
            ),
            compiler_params=pltpu.CompilerParams(
                dimension_semantics=("parallel", "arbitrary"),
                vmem_limit_bytes=vmem_limit,
            ),
            cost_estimate=cost,
        )(x2d, w1, b1_2d, w2, b2_2d)

    try:
        out2d = run(single_buffer=True)
    except Exception:
        # Defensive fallback if this JAX build rejects pipeline_mode=Buffered(1);
        # semantics are identical, only the weight buffering differs.
        out2d = run(single_buffer=False)

    return out2d.reshape(B, S, D)


def _ref_feed_forward(x, w1, b1, w2, b2):
    """Pure-JAX reference mirroring the torch module (eval mode)."""
    h = jnp.einsum("bsd,dh->bsh", x, w1) + b1
    h = jax.nn.gelu(h, approximate=False)
    return jnp.einsum("bsh,hd->bsd", h, w2) + b2


def _make_params(key, D, H, dtype=jnp.float32):
    kw1, kb1, kw2, kb2 = jax.random.split(key, 4)
    bound1 = 1.0 / math.sqrt(D)
    w1 = jax.random.uniform(kw1, (D, H), dtype, -bound1, bound1)
    b1 = jax.random.uniform(kb1, (H,), dtype, -bound1, bound1)
    bound2 = 1.0 / math.sqrt(H)
    w2 = jax.random.uniform(kw2, (H, D), dtype, -bound2, bound2)
    b2 = jax.random.uniform(kb2, (D,), dtype, -bound2, bound2)
    return w1, b1, w2, b2


if __name__ == "__main__":
    key = jax.random.PRNGKey(0)
    k1, k2, k3, k4 = jax.random.split(key, 4)

    # --- Test 1: tiny MLP-Mixer-ish shapes, default config (single tile). ---
    B, S, D, H = 2, 8, 4, 32
    x = jax.random.normal(k1, (B, S, D), dtype=jnp.float32)
    w1, b1, w2, b2 = _make_params(k2, D, H)
    ref = _ref_feed_forward(x, w1, b1, w2, b2)

    out = jax.block_until_ready(feed_forward(x, w1, b1, w2, b2))
    assert out.shape == (B, S, D)
    assert jnp.allclose(out, ref, atol=1e-5, rtol=1e-5), (
        f"max err {jnp.max(jnp.abs(out - ref))}")

    # --- Test 2: force a multi-step token grid (block_m=8 -> 2 tiles). ------
    out_tiled = jax.block_until_ready(
        feed_forward(x, w1, b1, w2, b2, block_m=8))
    assert jnp.allclose(out_tiled, ref, atol=1e-5, rtol=1e-5), (
        f"max err (tiled) {jnp.max(jnp.abs(out_tiled - ref))}")

    # --- Test 3: hidden-chunked + weight-padded + ragged token tile. --------
    # N = 15 (ragged vs tm=8), H = 192 with hidden_block=128 -> chunks of 128,
    # H padded to 256 inside the wrapper.
    B3, S3, D3, H3 = 3, 5, 4, 192
    x3 = jax.random.normal(k3, (B3, S3, D3), dtype=jnp.float32)
    w1_3, b1_3, w2_3, b2_3 = _make_params(k4, D3, H3)
    ref3 = _ref_feed_forward(x3, w1_3, b1_3, w2_3, b2_3)

    out3 = jax.block_until_ready(
        feed_forward(x3, w1_3, b1_3, w2_3, b2_3, block_m=8, hidden_block=128))
    assert out3.shape == (B3, S3, D3)
    assert jnp.allclose(out3, ref3, atol=1e-5, rtol=1e-5), (
        f"max err (chunked) {jnp.max(jnp.abs(out3 - ref3))}")

    print("KERNEL_OK")
</pallas_src>

<mosaic_0001>
module attributes {stable_mosaic.version = 11 : i64} {
  func.func @_ffn_kernel(%arg0: i32, %arg1: i32, %arg2: memref<16x4xf32, #tpu.memory_space<vmem>>, %arg3: memref<4x32xf32, #tpu.memory_space<vmem>>, %arg4: memref<1x32xf32, #tpu.memory_space<vmem>>, %arg5: memref<32x4xf32, #tpu.memory_space<vmem>>, %arg6: memref<1x4xf32, #tpu.memory_space<vmem>>, %arg7: memref<16x4xf32, #tpu.memory_space<vmem>>, %arg8: memref<16x4xf32, #tpu.memory_space<vmem>>) attributes {dimension_semantics = [#tpu.dimension_semantics<parallel>, #tpu.dimension_semantics<arbitrary>], iteration_bounds = array<i64: 1, 1>, scalar_prefetch = 0 : i64, scratch_operands = 1 : i64, tpu.core_type = #tpu.core_type<tc>, window_params = [{transform_indices = @transform_0, window_bounds = array<i64: 16, 4>}, {pipeline_mode = #tpu.pipeline_mode<synchronous>, transform_indices = @transform_1, window_bounds = array<i64: 4, 32>}, {pipeline_mode = #tpu.pipeline_mode<synchronous>, transform_indices = @transform_2, window_bounds = array<i64: 1, 32>}, {pipeline_mode = #tpu.pipeline_mode<synchronous>, transform_indices = @transform_3, window_bounds = array<i64: 32, 4>}, {pipeline_mode = #tpu.pipeline_mode<synchronous>, transform_indices = @transform_4, window_bounds = array<i64: 1, 4>}, {transform_indices = @transform_5, window_bounds = array<i64: 16, 4>}]} {
    %c0_i32 = arith.constant 0 : i32
    %0 = arith.cmpi eq, %arg1, %c0_i32 : i32
    %1 = arith.extui %0 : i1 to i32
    %c0_i32_0 = arith.constant 0 : i32
    %2 = arith.cmpi ne, %1, %c0_i32_0 : i32
    scf.if %2 {
      %cst_18 = arith.constant 0.000000e+00 : f32
      %25 = vector.broadcast %cst_18 : f32 to vector<16x4xf32>
      %c0_19 = arith.constant 0 : index
      %c0_20 = arith.constant 0 : index
      %26 = vector.load %arg8[%c0_19, %c0_20] : memref<16x4xf32, #tpu.memory_space<vmem>>, vector<16x4xf32>
      tpu.vector_store %arg8[%c0_19, %c0_20], %25 {strides = array<i32>} : memref<16x4xf32, #tpu.memory_space<vmem>>, vector<16x4xf32>,
    } else {
    }
    %c0 = arith.constant 0 : index
    %c0_1 = arith.constant 0 : index
    %3 = vector.load %arg2[%c0, %c0_1] : memref<16x4xf32, #tpu.memory_space<vmem>>, vector<16x4xf32>
    %c0_2 = arith.constant 0 : index
    %c0_3 = arith.constant 0 : index
    %4 = vector.load %arg3[%c0_2, %c0_3] : memref<4x32xf32, #tpu.memory_space<vmem>>, vector<4x32xf32>
    %cst = arith.constant dense<0.000000e+00> : vector<16x32xf32>
    %5 = tpu.matmul %3, %4, %cst {dimension_numbers = #tpu.dot_dimension_numbers<[1], [0], [0], [1], [0, 0, 1, 1], [], []>} : vector<16x4xf32>, vector<4x32xf32>, vector<16x32xf32> -> vector<16x32xf32>
    %c0_4 = arith.constant 0 : index
    %c0_5 = arith.constant 0 : index
    %6 = vector.load %arg4[%c0_4, %c0_5] : memref<1x32xf32, #tpu.memory_space<vmem>>, vector<1x32xf32>
    %7 = vector.broadcast %6 : vector<1x32xf32> to vector<16x32xf32>
    %8 = arith.addf %5, %7 : vector<16x32xf32>
    %cst_6 = arith.constant 5.000000e-01 : f32
    %9 = vector.broadcast %cst_6 : f32 to vector<16x32xf32>
    %10 = arith.mulf %9, %8 : vector<16x32xf32>
    %cst_7 = arith.constant 0.707106769 : f32
    %11 = vector.broadcast %cst_7 : f32 to vector<16x32xf32>
    %12 = arith.mulf %8, %11 : vector<16x32xf32>
    %13 = math.erf %12 : vector<16x32xf32>
    %cst_8 = arith.constant 1.000000e+00 : f32
    %14 = vector.broadcast %cst_8 : f32 to vector<16x32xf32>
    %15 = arith.addf %14, %13 : vector<16x32xf32>
    %16 = arith.mulf %10, %15 : vector<16x32xf32>
    %c0_9 = arith.constant 0 : index
    %c0_10 = arith.constant 0 : index
    %17 = vector.load %arg8[%c0_9, %c0_10] : memref<16x4xf32, #tpu.memory_space<vmem>>, vector<16x4xf32>
    %c0_11 = arith.constant 0 : index
    %c0_12 = arith.constant 0 : index
    %18 = vector.load %arg5[%c0_11, %c0_12] : memref<32x4xf32, #tpu.memory_space<vmem>>, vector<32x4xf32>
    %cst_13 = arith.constant dense<0.000000e+00> : vector<16x4xf32>
    %19 = tpu.matmul %16, %18, %cst_13 {dimension_numbers = #tpu.dot_dimension_numbers<[1], [0], [0], [1], [0, 0, 1, 1], [], []>} : vector<16x32xf32>, vector<32x4xf32>, vector<16x4xf32> -> vector<16x4xf32>
    %20 = arith.addf %17, %19 : vector<16x4xf32>
    %c0_14 = arith.constant 0 : index
    %c0_15 = arith.constant 0 : index
    %21 = vector.load %arg8[%c0_14, %c0_15] : memref<16x4xf32, #tpu.memory_space<vmem>>, vector<16x4xf32>
    tpu.vector_store %arg8[%c0_14, %c0_15], %20 {strides = array<i32>} : memref<16x4xf32, #tpu.memory_space<vmem>>, vector<16x4xf32>,
    %c0_i32_16 = arith.constant 0 : i32
    %22 = arith.cmpi eq, %arg1, %c0_i32_16 : i32
    %23 = arith.extui %22 : i1 to i32
    %c0_i32_17 = arith.constant 0 : i32
    %24 = arith.cmpi ne, %23, %c0_i32_17 : i32
    scf.if %24 {
      %c0_18 = arith.constant 0 : index
      %c0_19 = arith.constant 0 : index
      %25 = vector.load %arg8[%c0_18, %c0_19] : memref<16x4xf32, #tpu.memory_space<vmem>>, vector<16x4xf32>
      %c0_20 = arith.constant 0 : index
      %c0_21 = arith.constant 0 : index
      %26 = vector.load %arg6[%c0_20, %c0_21] : memref<1x4xf32, #tpu.memory_space<vmem>>, vector<1x4xf32>
      %27 = vector.broadcast %26 : vector<1x4xf32> to vector<16x4xf32>
      %28 = arith.addf %25, %27 : vector<16x4xf32>
      %c0_22 = arith.constant 0 : index
      %c0_23 = arith.constant 0 : index
      %29 = vector.load %arg7[%c0_22, %c0_23] : memref<16x4xf32, #tpu.memory_space<vmem>>, vector<16x4xf32>
      tpu.vector_store %arg7[%c0_22, %c0_23], %28 {strides = array<i32>} : memref<16x4xf32, #tpu.memory_space<vmem>>, vector<16x4xf32>,
    } else {
    }
    return
  }
  func.func @transform_0(%arg0: i32, %arg1: i32) -> (i32, i32) {
    %c0_i32 = arith.constant 0 : i32
    %c0_i32_0 = arith.constant 0 : i32
    return %arg0, %c0_i32 : i32, i32
  }
  func.func @transform_1(%arg0: i32, %arg1: i32) -> (i32, i32) {
    %c0_i32 = arith.constant 0 : i32
    %c0_i32_0 = arith.constant 0 : i32
    return %c0_i32, %arg1 : i32, i32
  }
  func.func @transform_2(%arg0: i32, %arg1: i32) -> (i32, i32) {
    %c0_i32 = arith.constant 0 : i32
    %c0_i32_0 = arith.constant 0 : i32
    return %c0_i32, %arg1 : i32, i32
  }
  func.func @transform_3(%arg0: i32, %arg1: i32) -> (i32, i32) {
    %c0_i32 = arith.constant 0 : i32
    %c0_i32_0 = arith.constant 0 : i32
    return %arg1, %c0_i32 : i32, i32
  }
  func.func @transform_4(%arg0: i32, %arg1: i32) -> (i32, i32) {
    %c0_i32 = arith.constant 0 : i32
    %c0_i32_0 = arith.constant 0 : i32
    %c0_i32_1 = arith.constant 0 : i32
    return %c0_i32, %c0_i32_0 : i32, i32
  }
  func.func @transform_5(%arg0: i32, %arg1: i32) -> (i32, i32) {
    %c0_i32 = arith.constant 0 : i32
    %c0_i32_0 = arith.constant 0 : i32
    return %arg0, %c0_i32 : i32, i32
  }
}

module attributes {stable_mosaic.version = 11 : i64} {
  func.func @_ffn_kernel(%arg0: i32, %arg1: i32, %arg2: memref<16x4xf32, #tpu.memory_space<vmem>>, %arg3: memref<4x32xf32, #tpu.memory_space<vmem>>, %arg4: memref<1x32xf32, #tpu.memory_space<vmem>>, %arg5: memref<32x4xf32, #tpu.memory_space<vmem>>, %arg6: memref<1x4xf32, #tpu.memory_space<vmem>>, %arg7: memref<16x4xf32, #tpu.memory_space<vmem>>, %arg8: memref<16x4xf32, #tpu.memory_space<vmem>>) attributes {dimension_semantics = [#tpu.dimension_semantics<parallel>, #tpu.dimension_semantics<arbitrary>], iteration_bounds = array<i64: 1, 1>, scalar_prefetch = 0 : i64, scratch_operands = 1 : i64, tpu.core_type = #tpu.core_type<tc>, window_params = [{transform_indices = @transform_0, window_bounds = array<i64: 16, 4>}, {transform_indices = @transform_1, window_bounds = array<i64: 4, 32>}, {transform_indices = @transform_2, window_bounds = array<i64: 1, 32>}, {transform_indices = @transform_3, window_bounds = array<i64: 32, 4>}, {pipeline_mode = #tpu.pipeline_mode<synchronous>, transform_indices = @transform_4, window_bounds = array<i64: 1, 4>}, {transform_indices = @transform_5, window_bounds = array<i64: 16, 4>}]} {
    %c0_i32 = arith.constant 0 : i32
    %0 = arith.cmpi eq, %arg1, %c0_i32 : i32
    %1 = arith.extui %0 : i1 to i32
    %c0_i32_0 = arith.constant 0 : i32
    %2 = arith.cmpi ne, %1, %c0_i32_0 : i32
    scf.if %2 {
      %cst_18 = arith.constant 0.000000e+00 : f32
      %25 = vector.broadcast %cst_18 : f32 to vector<16x4xf32>
      %c0_19 = arith.constant 0 : index
      %c0_20 = arith.constant 0 : index
      %26 = vector.load %arg8[%c0_19, %c0_20] : memref<16x4xf32, #tpu.memory_space<vmem>>, vector<16x4xf32>
      tpu.vector_store %arg8[%c0_19, %c0_20], %25 {strides = array<i32>} : memref<16x4xf32, #tpu.memory_space<vmem>>, vector<16x4xf32>,
    } else {
    }
    %c0 = arith.constant 0 : index
    %c0_1 = arith.constant 0 : index
    %3 = vector.load %arg2[%c0, %c0_1] : memref<16x4xf32, #tpu.memory_space<vmem>>, vector<16x4xf32>
    %c0_2 = arith.constant 0 : index
    %c0_3 = arith.constant 0 : index
    %4 = vector.load %arg3[%c0_2, %c0_3] : memref<4x32xf32, #tpu.memory_space<vmem>>, vector<4x32xf32>
    %cst = arith.constant dense<0.000000e+00> : vector<16x32xf32>
    %5 = tpu.matmul %3, %4, %cst {dimension_numbers = #tpu.dot_dimension_numbers<[1], [0], [0], [1], [0, 0, 1, 1], [], []>} : vector<16x4xf32>, vector<4x32xf32>, vector<16x32xf32> -> vector<16x32xf32>
    %c0_4 = arith.constant 0 : index
    %c0_5 = arith.constant 0 : index
    %6 = vector.load %arg4[%c0_4, %c0_5] : memref<1x32xf32, #tpu.memory_space<vmem>>, vector<1x32xf32>
    %7 = vector.broadcast %6 : vector<1x32xf32> to vector<16x32xf32>
    %8 = arith.addf %5, %7 : vector<16x32xf32>
    %cst_6 = arith.constant 5.000000e-01 : f32
    %9 = vector.broadcast %cst_6 : f32 to vector<16x32xf32>
    %10 = arith.mulf %9, %8 : vector<16x32xf32>
    %cst_7 = arith.constant 0.707106769 : f32
    %11 = vector.broadcast %cst_7 : f32 to vector<16x32xf32>
    %12 = arith.mulf %8, %11 : vector<16x32xf32>
    %13 = math.erf %12 : vector<16x32xf32>
    %cst_8 = arith.constant 1.000000e+00 : f32
    %14 = vector.broadcast %cst_8 : f32 to vector<16x32xf32>
    %15 = arith.addf %14, %13 : vector<16x32xf32>
    %16 = arith.mulf %10, %15 : vector<16x32xf32>
    %c0_9 = arith.constant 0 : index
    %c0_10 = arith.constant 0 : index
    %17 = vector.load %arg8[%c0_9, %c0_10] : memref<16x4xf32, #tpu.memory_space<vmem>>, vector<16x4xf32>
    %c0_11 = arith.constant 0 : index
    %c0_12 = arith.constant 0 : index
    %18 = vector.load %arg5[%c0_11, %c0_12] : memref<32x4xf32, #tpu.memory_space<vmem>>, vector<32x4xf32>
    %cst_13 = arith.constant dense<0.000000e+00> : vector<16x4xf32>
    %19 = tpu.matmul %16, %18, %cst_13 {dimension_numbers = #tpu.dot_dimension_numbers<[1], [0], [0], [1], [0, 0, 1, 1], [], []>} : vector<16x32xf32>, vector<32x4xf32>, vector<16x4xf32> -> vector<16x4xf32>
    %20 = arith.addf %17, %19 : vector<16x4xf32>
    %c0_14 = arith.constant 0 : index
    %c0_15 = arith.constant 0 : index
    %21 = vector.load %arg8[%c0_14, %c0_15] : memref<16x4xf32, #tpu.memory_space<vmem>>, vector<16x4xf32>
    tpu.vector_store %arg8[%c0_14, %c0_15], %20 {strides = array<i32>} : memref<16x4xf32, #tpu.memory_space<vmem>>, vector<16x4xf32>,
    %c0_i32_16 = arith.constant 0 : i32
    %22 = arith.cmpi eq, %arg1, %c0_i32_16 : i32
    %23 = arith.extui %22 : i1 to i32
    %c0_i32_17 = arith.constant 0 : i32
    %24 = arith.cmpi ne, %23, %c0_i32_17 : i32
    scf.if %24 {
      %c0_18 = arith.constant 0 : index
      %c0_19 = arith.constant 0 : index
      %25 = vector.load %arg8[%c0_18, %c0_19] : memref<16x4xf32, #tpu.memory_space<vmem>>, vector<16x4xf32>
      %c0_20 = arith.constant 0 : index
      %c0_21 = arith.constant 0 : index
      %26 = vector.load %arg6[%c0_20, %c0_21] : memref<1x4xf32, #tpu.memory_space<vmem>>, vector<1x4xf32>
      %27 = vector.broadcast %26 : vector<1x4xf32> to vector<16x4xf32>
      %28 = arith.addf %25, %27 : vector<16x4xf32>
      %c0_22 = arith.constant 0 : index
      %c0_23 = arith.constant 0 : index
      %29 = vector.load %arg7[%c0_22, %c0_23] : memref<16x4xf32, #tpu.memory_space<vmem>>, vector<16x4xf32>
      tpu.vector_store %arg7[%c0_22, %c0_23], %28 {strides = array<i32>} : memref<16x4xf32, #tpu.memory_space<vmem>>, vector<16x4xf32>,
    } else {
    }
    return
  }
  func.func @transform_0(%arg0: i32, %arg1: i32) -> (i32, i32) {
    %c0_i32 = arith.constant 0 : i32
    %c0_i32_0 = arith.constant 0 : i32
    return %arg0, %c0_i32 : i32, i32
  }
  func.func @transform_1(%arg0: i32, %arg1: i32) -> (i32, i32) {
    %c0_i32 = arith.constant 0 : i32
    %c0_i32_0 = arith.constant 0 : i32
    return %c0_i32, %arg1 : i32, i32
  }
  func.func @transform_2(%arg0: i32, %arg1: i32) -> (i32, i32) {
    %c0_i32 = arith.constant 0 : i32
    %c0_i32_0 = arith.constant 0 : i32
    return %c0_i32, %arg1 : i32, i32
  }
  func.func @transform_3(%arg0: i32, %arg1: i32) -> (i32, i32) {
    %c0_i32 = arith.constant 0 : i32
    %c0_i32_0 = arith.constant 0 : i32
    return %arg1, %c0_i32 : i32, i32
  }
  func.func @transform_4(%arg0: i32, %arg1: i32) -> (i32, i32) {
    %c0_i32 = arith.constant 0 : i32
    %c0_i32_0 = arith.constant 0 : i32
    %c0_i32_1 = arith.constant 0 : i32
    return %c0_i32, %c0_i32_0 : i32, i32
  }
  func.func @transform_5(%arg0: i32, %arg1: i32) -> (i32, i32) {
    %c0_i32 = arith.constant 0 : i32
    %c0_i32_0 = arith.constant 0 : i32
    return %arg0, %c0_i32 : i32, i32
  }
}

</mosaic_0001>

<bundles_post_ra>
// kernel: tpu_custom_call.1
= control target key start
LH: loop header
LB: loop body
LE: loop exit
PB: predicated region body
PF: predicated region fallthrough
CT: control target
= control target key end

     0   :  { %vm44_vm0 = vcmask 1043456   ;;  %vm24_vm1 = vcmask 31744   ;;  %v290_v9 = vmov 0.0   ;;  %vm139_vm2 = vcmask 261120   ;;  %s362_s1 = inlined_call_operand.vmem [shape: f32[4,32], index: 1, kind: input, shape index: {}]   ;;  %s363_s0 = inlined_call_operand.vmem [shape: f32[16,4], index: 0, kind: input, shape index: {}]   ;;  %s364_s3 = inlined_call_operand.vmem [shape: f32[32,4], index: 3, kind: input, shape index: {}]   ;;  %s365_s2 = inlined_call_operand.vmem [shape: f32[1,32], index: 2, kind: input, shape index: {}]   ;;  %s366_s4 = inlined_call_operand.vmem [shape: f32[1,4], index: 4, kind: input, shape index: {}]   ;;  %s367_s5 = inlined_call_operand.vmem [shape: f32[16,4], index: 5, kind: output, shape index: {}]  }
   0x1   :  { %v29_v0 = vld [vmem:[%s362_s1] sm:$0xf]  ;;  %v28_v2 = vld [vmem:[%s363_s0 + $0x8] sm:$0xff]  ;;  %v137_v6 = vld [vmem:[%s364_s3 + $0x10] sm:$0xff]  ;;  %26 = vst.msk [vmem:[#allocation2 + $0x8] sm:$0xff] %vm24_vm1, %v290_v9 }
   0x2   :  { %v27_v1 = vld [vmem:[%s363_s0] sm:$0xff]  ;;  %261 = vmatprep.subr.msk.mxu0 %vm44_vm0, %v29_v0  ;;  %v136_v4 = vld [vmem:[%s364_s3 + $0x8] sm:$0xff]  ;;  %v138_v7 = vld [vmem:[%s364_s3 + $0x18] sm:$0xff]  ;;  %25 = vst.msk [vmem:[#allocation2] sm:$0xff] %vm24_vm1, %v290_v9 }
   0x3   :  { %263 = vmatprep.mubr.msk.f32.mxu0 %vm24_vm1, %v27_v1  ;;  %262 = vmatpush3.msk.msra.mxu0 %vm44_vm0, %v29_v0  ;;  %v135_v3 = vld [vmem:[%s364_s3] sm:$0xff]  ;;  %v281_v8 = vpack.c.bf16 %v138_v7, %v137_v6 }
   0x4   :  { %264 = vmatmul.mubr.msk.f32.vlgmr.msra.gmra.mrb[0].mxu0 %vm24_vm1, %v28_v2  ;;  %v277_v5 = vpack.c.bf16 %v136_v4, %v135_v3  ;;  %v245_v10 = vld [vmem:[%s365_s2] ss:$0 sm:$0xff] }
   0x5   :  { %v251_v31 = vld [vmem:[%s366_s4] ss:$0 sm:$0xff] }
   0x6   :  { %278 = vmatprep.subr.bf16.mxu1 %v277_v5 }
   0x7   :  { %280 = vmatpush3.bf16.msra.mxu1 %v277_v5 }
   0x8   :  { %282 = vmatprep.subr.bf16.mxu1 %v281_v8  ;;  %v134_v25 = vld [vmem:[#allocation2 + $0x8] sm:$0xff] }
   0x9   :  { %v133_v26 = vld [vmem:[#allocation2] sm:$0xff] }
   0xb   :  { %284 = vmatpush3.bf16.msra.mxu1 %v281_v8 }
  0xd7   :  { %v265_v11 = vpop.f32.mrb[0].mxu0 }
  0xd8   :  { %v120_v12 = vadd.f32 %v265_v11, %v245_v10  ;;  %v114_v13 = vpop.f32.mrb[1].mxu0 }
  0xd9   :  { %v115_v14 = vadd.f32 %v245_v10, %v114_v13 }
  0xda   :  { %v126_v15 = vmul.f32 0.70710677, %v120_v12  ;;  %v124_v22 = vmul.f32 0.5, %v120_v12 }
  0xdb   :  { %v125_v16 = vmul.f32 0.70710677, %v115_v14  ;;  %v123_v20 = vmul.f32 0.5, %v115_v14 }
  0xdc   :  { %286 = verf.f32 %v126_v15 }
  0xdd   :  { %288 = verf.f32 %v125_v16 }
  0xe6   :  { %v287_v17 = vpop.eup %286 }
  0xe7   :  { %v289_v18 = vpop.eup %288  ;;  %v130_v19 = vadd.f32 1.0, %v287_v17 }
  0xe8   :  { %v129_v21 = vadd.f32 1.0, %v289_v18 }
  0xe9   :  { %v132_v24 = vmul.f32 %v130_v19, %v124_v22 }
  0xea   :  { %v131_v23 = vmul.f32 %v129_v21, %v123_v20 }
  0xec   :  { %274 = vmatprep.mubr.msk.f32.mxu1 %vm139_vm2, %v131_v23 }
  0xed   :  { %275 = vmatmul.mubr.msk.f32.vlgmr.msra.gmra.mrb[0].mxu1 %vm139_vm2, %v132_v24 }
 0x1c0   :  { %v276_v27 = vpop.f32.mrb[0].mxu1 }
 0x1c1   :  { %v222_v28 = vadd.f32 %v276_v27, %v134_v25  ;;  %v212_v29 = vpop.f32.mrb[1].mxu1 }
 0x1c2   :  { %v221_v30 = vadd.f32 %v212_v29, %v133_v26 }
 0x1c3   :  { %224 = vst.msk [vmem:[#allocation2 + $0x8] sm:$0xff] %vm24_vm1, %v222_v28 }
 0x1c4   :  { %223 = vst.msk [vmem:[#allocation2] sm:$0xff] %vm24_vm1, %v221_v30 }
 0x1ca   :  { %v229_v32 = vld [vmem:[#allocation2 + $0x8] sm:$0xff] }
 0x1cb   :  { %v238_v33 = vadd.f32 %v251_v31, %v229_v32  ;;  %v228_v34 = vld [vmem:[#allocation2] sm:$0xff] }
 0x1cc   :  { %v237_v35 = vadd.f32 %v251_v31, %v228_v34 }
 0x1cd   :  { %240 = vst.msk [vmem:[%s367_s5 + $0x8] sm:$0xff] %vm24_vm1, %v238_v33 }
 0x1ce   :  { %239 = vst.msk [vmem:[%s367_s5] sm:$0xff] %vm24_vm1, %v237_v35 }

// kernel: tpu_custom_call.1
= control target key start
LH: loop header
LB: loop body
LE: loop exit
PB: predicated region body
PF: predicated region fallthrough
CT: control target
= control target key end

     0   :  { %vm44_vm0 = vcmask 1043456   ;;  %vm24_vm1 = vcmask 31744   ;;  %v290_v9 = vmov 0.0   ;;  %vm139_vm2 = vcmask 261120   ;;  %s362_s1 = inlined_call_operand.vmem [shape: f32[4,32], index: 1, kind: input, shape index: {}]   ;;  %s363_s0 = inlined_call_operand.vmem [shape: f32[16,4], index: 0, kind: input, shape index: {}]   ;;  %s364_s3 = inlined_call_operand.vmem [shape: f32[32,4], index: 3, kind: input, shape index: {}]   ;;  %s365_s2 = inlined_call_operand.vmem [shape: f32[1,32], index: 2, kind: input, shape index: {}]   ;;  %s366_s4 = inlined_call_operand.vmem [shape: f32[1,4], index: 4, kind: input, shape index: {}]   ;;  %s367_s5 = inlined_call_operand.vmem [shape: f32[16,4], index: 5, kind: output, shape index: {}]  }
   0x1   :  { %v29_v0 = vld [vmem:[%s362_s1] sm:$0xf]  ;;  %v28_v2 = vld [vmem:[%s363_s0 + $0x8] sm:$0xff]  ;;  %v137_v6 = vld [vmem:[%s364_s3 + $0x10] sm:$0xff]  ;;  %26 = vst.msk [vmem:[#allocation2 + $0x8] sm:$0xff] %vm24_vm1, %v290_v9 }
   0x2   :  { %v27_v1 = vld [vmem:[%s363_s0] sm:$0xff]  ;;  %261 = vmatprep.subr.msk.mxu0 %vm44_vm0, %v29_v0  ;;  %v136_v4 = vld [vmem:[%s364_s3 + $0x8] sm:$0xff]  ;;  %v138_v7 = vld [vmem:[%s364_s3 + $0x18] sm:$0xff]  ;;  %25 = vst.msk [vmem:[#allocation2] sm:$0xff] %vm24_vm1, %v290_v9 }
   0x3   :  { %263 = vmatprep.mubr.msk.f32.mxu0 %vm24_vm1, %v27_v1  ;;  %262 = vmatpush3.msk.msra.mxu0 %vm44_vm0, %v29_v0  ;;  %v135_v3 = vld [vmem:[%s364_s3] sm:$0xff]  ;;  %v281_v8 = vpack.c.bf16 %v138_v7, %v137_v6 }
   0x4   :  { %264 = vmatmul.mubr.msk.f32.vlgmr.msra.gmra.mrb[0].mxu0 %vm24_vm1, %v28_v2  ;;  %v277_v5 = vpack.c.bf16 %v136_v4, %v135_v3  ;;  %v245_v10 = vld [vmem:[%s365_s2] ss:$0 sm:$0xff] }
   0x5   :  { %v251_v31 = vld [vmem:[%s366_s4] ss:$0 sm:$0xff] }
   0x6   :  { %278 = vmatprep.subr.bf16.mxu1 %v277_v5 }
   0x7   :  { %280 = vmatpush3.bf16.msra.mxu1 %v277_v5 }
   0x8   :  { %282 = vmatprep.subr.bf16.mxu1 %v281_v8  ;;  %v134_v25 = vld [vmem:[#allocation2 + $0x8] sm:$0xff] }
   0x9   :  { %v133_v26 = vld [vmem:[#allocation2] sm:$0xff] }
   0xb   :  { %284 = vmatpush3.bf16.msra.mxu1 %v281_v8 }
  0xd7   :  { %v265_v11 = vpop.f32.mrb[0].mxu0 }
  0xd8   :  { %v120_v12 = vadd.f32 %v265_v11, %v245_v10  ;;  %v114_v13 = vpop.f32.mrb[1].mxu0 }
  0xd9   :  { %v115_v14 = vadd.f32 %v245_v10, %v114_v13 }
  0xda   :  { %v126_v15 = vmul.f32 0.70710677, %v120_v12  ;;  %v124_v22 = vmul.f32 0.5, %v120_v12 }
  0xdb   :  { %v125_v16 = vmul.f32 0.70710677, %v115_v14  ;;  %v123_v20 = vmul.f32 0.5, %v115_v14 }
  0xdc   :  { %286 = verf.f32 %v126_v15 }
  0xdd   :  { %288 = verf.f32 %v125_v16 }
  0xe6   :  { %v287_v17 = vpop.eup %286 }
  0xe7   :  { %v289_v18 = vpop.eup %288  ;;  %v130_v19 = vadd.f32 1.0, %v287_v17 }
  0xe8   :  { %v129_v21 = vadd.f32 1.0, %v289_v18 }
  0xe9   :  { %v132_v24 = vmul.f32 %v130_v19, %v124_v22 }
  0xea   :  { %v131_v23 = vmul.f32 %v129_v21, %v123_v20 }
  0xec   :  { %274 = vmatprep.mubr.msk.f32.mxu1 %vm139_vm2, %v131_v23 }
  0xed   :  { %275 = vmatmul.mubr.msk.f32.vlgmr.msra.gmra.mrb[0].mxu1 %vm139_vm2, %v132_v24 }
 0x1c0   :  { %v276_v27 = vpop.f32.mrb[0].mxu1 }
 0x1c1   :  { %v222_v28 = vadd.f32 %v276_v27, %v134_v25  ;;  %v212_v29 = vpop.f32.mrb[1].mxu1 }
 0x1c2   :  { %v221_v30 = vadd.f32 %v212_v29, %v133_v26 }
 0x1c3   :  { %224 = vst.msk [vmem:[#allocation2 + $0x8] sm:$0xff] %vm24_vm1, %v222_v28 }
 0x1c4   :  { %223 = vst.msk [vmem:[#allocation2] sm:$0xff] %vm24_vm1, %v221_v30 }
 0x1ca   :  { %v229_v32 = vld [vmem:[#allocation2 + $0x8] sm:$0xff] }
 0x1cb   :  { %v238_v33 = vadd.f32 %v251_v31, %v229_v32  ;;  %v228_v34 = vld [vmem:[#allocation2] sm:$0xff] }
 0x1cc   :  { %v237_v35 = vadd.f32 %v251_v31, %v228_v34 }
 0x1cd   :  { %240 = vst.msk [vmem:[%s367_s5 + $0x8] sm:$0xff] %vm24_vm1, %v238_v33 }
 0x1ce   :  { %239 = vst.msk [vmem:[%s367_s5] sm:$0xff] %vm24_vm1, %v237_v35 }

</bundles_post_ra>
